<compile_context>
chip_gen: v6e
topology: v6e:2x2x1
jax: 0.10.0
libtpu: 0.0.40
codegen_flags: <defaults>
</compile_context>

<pallas_src>
import functools

import jax
import jax.numpy as jnp
from jax.experimental import pallas as pl
from jax.experimental.pallas import tpu as pltpu

BN_EPS = 1e-5      # nn.BatchNorm1d default eps
NORM_EPS = 1e-12   # F.normalize default eps


def _round_up(x, m):
    return (x + m - 1) // m * m


def _stats_kernel(x_ref, g_ref, s_ref):
    """Accumulate sufficient statistics of x over all (batch, length) columns."""
    @pl.when((pl.program_id(0) == 0) & (pl.program_id(1) == 0))
    def _():
        g_ref[...] = jnp.zeros_like(g_ref)
        s_ref[...] = jnp.zeros_like(s_ref)

    x = x_ref[...]                                     # (C_in, T)
    # Gram matrix: contract the lane (length) axis of both operands ("A @ A^T" on the MXU).
    g_ref[...] += jax.lax.dot_general(
        x, x, (((1,), (1,)), ((), ())), preferred_element_type=jnp.float32)
    s_ref[...] += jnp.sum(x, axis=1, keepdims=True)    # (C_in, 1)


def _apply_kernel(x_ref, w_ref, b_ref, o_ref):
    """h2 = W_eff @ x + b_eff, then L2-normalize each column over channels."""
    x = x_ref[...]                                                  # (C_in, T)
    h2 = jnp.dot(w_ref[...], x, preferred_element_type=jnp.float32) + b_ref[...]
    sumsq = jnp.sum(h2 * h2, axis=0, keepdims=True)                 # (1, T)
    # F.normalize: h2 / max(||h2||, eps)  ==  h2 * rsqrt(max(sumsq, eps^2))
    o_ref[...] = h2 * jax.lax.rsqrt(jnp.maximum(sumsq, NORM_EPS * NORM_EPS))


@functools.partial(jax.jit, static_argnames=("scale_factor", "tile_l"))
def projection_head_forward(x, w1, b1, gamma, beta, w2, b2,
                            scale_factor=8, tile_l=2048):
    """x: (N, C_in, L) f32; w1: (C_in, C_in); w2: (P, C_in); b1/gamma/beta: (C_in,); b2: (P,).
    Returns (N, P, L*scale_factor), matching the PyTorch module in train() mode."""
    n, c_in, l = x.shape
    p = w2.shape[0]

    # Lane-dense tiling of the length axis (multiple of 128; zero-pad L if needed).
    t = min(tile_l, _round_up(l, 128))
    l_pad = _round_up(l, t)
    if l_pad != l:
        x = jnp.pad(x, ((0, 0), (0, 0), (0, l_pad - l)))   # zero cols: exact for the stats pass
    n_t = l_pad // t

    vmem_limit = 32 * 1024 * 1024  # safe on v5e (16 MiB default scoped) and v7x (64 MiB phys)
    cparams_acc = pltpu.CompilerParams(
        dimension_semantics=("arbitrary", "arbitrary"), vmem_limit_bytes=vmem_limit)
    cparams_par = pltpu.CompilerParams(
        dimension_semantics=("parallel", "parallel"), vmem_limit_bytes=vmem_limit)

    # ---- Pass 1: per-channel sufficient statistics of x (tiled reduction over N and L). ----
    gram, rowsum = pl.pallas_call(
        _stats_kernel,
        out_shape=(jax.ShapeDtypeStruct((c_in, c_in), jnp.float32),
                   jax.ShapeDtypeStruct((c_in, 1), jnp.float32)),
        grid=(n, n_t),
        in_specs=[pl.BlockSpec((None, c_in, t), lambda b, i: (b, 0, i))],
        out_specs=(pl.BlockSpec((c_in, c_in), lambda b, i: (0, 0)),
                   pl.BlockSpec((c_in, 1), lambda b, i: (0, 0))),
        compiler_params=cparams_acc,
    )(x)

    # ---- Fold conv1 + BatchNorm(batch stats, biased var) + conv2 into one (P, C_in) weight. ----
    count = float(n * l)                          # true column count (padding contributed zeros)
    mean_x = rowsum[:, 0] / count                 # E[x]        (C_in,)
    m2 = gram / count                             # E[x x^T]    (C_in, C_in)
    cov = m2 - jnp.outer(mean_x, mean_x)
    mean_h1 = w1 @ mean_x + b1                                    # per-channel mean of conv1 out
    var_h1 = jnp.maximum(jnp.sum((w1 @ cov) * w1, axis=1), 0.0)   # diag(w1 @ cov @ w1^T)
    scale = gamma * jax.lax.rsqrt(var_h1 + BN_EPS)
    w_eff = w2 @ (scale[:, None] * w1)                            # (P, C_in)
    b_eff = (w2 @ (scale * (b1 - mean_h1) + beta) + b2)[:, None]  # (P, 1)

    # ---- Pass 2: one matmul + L2 normalize per independent (batch, length-tile) block. ----
    out = pl.pallas_call(
        _apply_kernel,
        out_shape=jax.ShapeDtypeStruct((n, p, l_pad), jnp.float32),
        grid=(n, n_t),
        in_specs=[pl.BlockSpec((None, c_in, t), lambda b, i: (b, 0, i)),
                  pl.BlockSpec((p, c_in), lambda b, i: (0, 0)),
                  pl.BlockSpec((p, 1), lambda b, i: (0, 0))],
        out_specs=pl.BlockSpec((None, p, t), lambda b, i: (b, 0, i)),
        compiler_params=cparams_par,
    )(x, w_eff, b_eff)

    out = out[:, :, :l]
    # Deferred nearest-neighbor x8 upsample (exact: the whole chain is pointwise along L and
    # the BN statistics are invariant under uniform column repetition).
    # TODO(synk): for a further ~1.25x on the store path, write the repeated output directly
    # from the kernel instead of via this XLA repeat.
    return jnp.repeat(out, scale_factor, axis=-1)


def _reference(x, w1, b1, gamma, beta, w2, b2, scale_factor=8):
    """Straightforward port of the PyTorch forward (upsample first), for validation."""
    x_up = jnp.repeat(x, scale_factor, axis=-1)                       # (N, C, L_up)
    h1 = jnp.einsum('oc,ncl->nol', w1, x_up) + b1[None, :, None]
    mean = jnp.mean(h1, axis=(0, 2), keepdims=True)
    var = jnp.mean((h1 - mean) ** 2, axis=(0, 2), keepdims=True)      # biased (train mode)
    hn = (h1 - mean) / jnp.sqrt(var + BN_EPS)
    hn = hn * gamma[None, :, None] + beta[None, :, None]
    h2 = jnp.einsum('oc,ncl->nol', w2, hn) + b2[None, :, None]
    norm = jnp.sqrt(jnp.sum(h2 * h2, axis=1, keepdims=True))
    return h2 / jnp.maximum(norm, NORM_EPS)


if __name__ == "__main__":
    key = jax.random.PRNGKey(0)
    N, C_IN, L, PROJ_DIM = 2, 32, 16, 128

    k = jax.random.split(key, 6)
    x = jax.random.normal(k[0], (N, C_IN, L), dtype=jnp.float32)

    # Conv1d(k=1) weights as (out, in); biases 1D.  BatchNorm1d default init: weight=1, bias=0.
    w1 = jax.random.normal(k[1], (C_IN, C_IN), dtype=jnp.float32) * 0.1
    b1 = jax.random.normal(k[2], (C_IN,), dtype=jnp.float32) * 0.1
    w2 = jax.random.normal(k[3], (PROJ_DIM, C_IN), dtype=jnp.float32) * 0.1
    b2 = jax.random.normal(k[4], (PROJ_DIM,), dtype=jnp.float32) * 0.1
    gamma = jnp.ones((C_IN,), dtype=jnp.float32)
    beta = jnp.zeros((C_IN,), dtype=jnp.float32)

    out = jax.block_until_ready(
        projection_head_forward(x, w1, b1, gamma, beta, w2, b2))

    ref = _reference(x, w1, b1, gamma, beta, w2, b2)
    assert out.shape == (N, PROJ_DIM, L * 8), out.shape
    max_err = float(jnp.max(jnp.abs(out - ref)))
    assert jnp.allclose(out, ref, atol=1e-4, rtol=1e-4), max_err

    print("KERNEL_OK")
</pallas_src>

<mosaic_0001>
module attributes {stable_mosaic.version = 11 : i64} {
  func.func @_stats_kernel(%arg0: i32, %arg1: i32, %arg2: memref<1x32x128xf32, #tpu.memory_space<vmem>>, %arg3: memref<32x32xf32, #tpu.memory_space<vmem>>, %arg4: memref<32x1xf32, #tpu.memory_space<vmem>>) attributes {dimension_semantics = [#tpu.dimension_semantics<arbitrary>, #tpu.dimension_semantics<arbitrary>], iteration_bounds = array<i64: 2, 1>, scalar_prefetch = 0 : i64, scratch_operands = 0 : i64, tpu.core_type = #tpu.core_type<tc>, window_params = [{transform_indices = @transform_0, window_bounds = array<i64: 1, 32, 128>}, {pipeline_mode = #tpu.pipeline_mode<synchronous>, transform_indices = @transform_1, window_bounds = array<i64: 32, 32>}, {pipeline_mode = #tpu.pipeline_mode<synchronous>, transform_indices = @transform_2, window_bounds = array<i64: 32, 1>}]} {
    %c0_i32 = arith.constant 0 : i32
    %0 = arith.cmpi eq, %arg0, %c0_i32 : i32
    %c0_i32_0 = arith.constant 0 : i32
    %1 = arith.cmpi eq, %arg1, %c0_i32_0 : i32
    %2 = arith.andi %0, %1 : i1
    %3 = arith.extui %2 : i1 to i32
    %c0_i32_1 = arith.constant 0 : i32
    %4 = arith.cmpi ne, %3, %c0_i32_1 : i32
    scf.if %4 {
      %cst_13 = arith.constant 0.000000e+00 : f32
      %16 = vector.broadcast %cst_13 : f32 to vector<32x32xf32>
      %c0_14 = arith.constant 0 : index
      %c0_15 = arith.constant 0 : index
      %17 = vector.load %arg3[%c0_14, %c0_15] : memref<32x32xf32, #tpu.memory_space<vmem>>, vector<32x32xf32>
      tpu.vector_store %arg3[%c0_14, %c0_15], %16 {strides = array<i32>} : memref<32x32xf32, #tpu.memory_space<vmem>>, vector<32x32xf32>,
      %cst_16 = arith.constant 0.000000e+00 : f32
      %18 = vector.broadcast %cst_16 : f32 to vector<32x1xf32>
      %c0_17 = arith.constant 0 : index
      %c0_18 = arith.constant 0 : index
      %19 = vector.load %arg4[%c0_17, %c0_18] : memref<32x1xf32, #tpu.memory_space<vmem>>, vector<32x1xf32>
      tpu.vector_store %arg4[%c0_17, %c0_18], %18 {strides = array<i32>} : memref<32x1xf32, #tpu.memory_space<vmem>>, vector<32x1xf32>,
    } else {
    }
    %c0 = arith.constant 0 : index
    %c0_2 = arith.constant 0 : index
    %c0_3 = arith.constant 0 : index
    %5 = vector.load %arg2[%c0, %c0_2, %c0_3] : memref<1x32x128xf32, #tpu.memory_space<vmem>>, vector<1x32x128xf32>
    %6 = vector.shape_cast %5 : vector<1x32x128xf32> to vector<32x128xf32>
    %c0_4 = arith.constant 0 : index
    %c0_5 = arith.constant 0 : index
    %7 = vector.load %arg3[%c0_4, %c0_5] : memref<32x32xf32, #tpu.memory_space<vmem>>, vector<32x32xf32>
    %cst = arith.constant dense<0.000000e+00> : vector<32x32xf32>
    %8 = tpu.matmul %6, %6, %cst {dimension_numbers = #tpu.dot_dimension_numbers<[1], [1], [0], [0], [0, 0, 1, 0], [], []>} : vector<32x128xf32>, vector<32x128xf32>, vector<32x32xf32> -> vector<32x32xf32>
    %9 = arith.addf %7, %8 : vector<32x32xf32>
    %c0_6 = arith.constant 0 : index
    %c0_7 = arith.constant 0 : index
    %10 = vector.load %arg3[%c0_6, %c0_7] : memref<32x32xf32, #tpu.memory_space<vmem>>, vector<32x32xf32>
    tpu.vector_store %arg3[%c0_6, %c0_7], %9 {strides = array<i32>} : memref<32x32xf32, #tpu.memory_space<vmem>>, vector<32x32xf32>,
    %c0_8 = arith.constant 0 : index
    %c0_9 = arith.constant 0 : index
    %11 = vector.load %arg4[%c0_8, %c0_9] : memref<32x1xf32, #tpu.memory_space<vmem>>, vector<32x1xf32>
    %cst_10 = arith.constant dense<0.000000e+00> : vector<32xf32>
    %12 = vector.multi_reduction <add>, %6, %cst_10 [1] : vector<32x128xf32> to vector<32xf32>
    %13 = vector.shape_cast %12 : vector<32xf32> to vector<32x1xf32>
    %14 = arith.addf %11, %13 : vector<32x1xf32>
    %c0_11 = arith.constant 0 : index
    %c0_12 = arith.constant 0 : index
    %15 = vector.load %arg4[%c0_11, %c0_12] : memref<32x1xf32, #tpu.memory_space<vmem>>, vector<32x1xf32>
    tpu.vector_store %arg4[%c0_11, %c0_12], %14 {strides = array<i32>} : memref<32x1xf32, #tpu.memory_space<vmem>>, vector<32x1xf32>,
    return
  }
  func.func @transform_0(%arg0: i32, %arg1: i32) -> (i32, i32, i32) {
    %c0_i32 = arith.constant 0 : i32
    %c0_i32_0 = arith.constant 0 : i32
    return %arg0, %c0_i32, %arg1 : i32, i32, i32
  }
  func.func @transform_1(%arg0: i32, %arg1: i32) -> (i32, i32) {
    %c0_i32 = arith.constant 0 : i32
    %c0_i32_0 = arith.constant 0 : i32
    %c0_i32_1 = arith.constant 0 : i32
    return %c0_i32, %c0_i32_0 : i32, i32
  }
  func.func @transform_2(%arg0: i32, %arg1: i32) -> (i32, i32) {
    %c0_i32 = arith.constant 0 : i32
    %c0_i32_0 = arith.constant 0 : i32
    %c0_i32_1 = arith.constant 0 : i32
    return %c0_i32, %c0_i32_0 : i32, i32
  }
}

module attributes {stable_mosaic.version = 11 : i64} {
  func.func @_apply_kernel(%arg0: i32, %arg1: i32, %arg2: memref<1x32x128xf32, #tpu.memory_space<vmem>>, %arg3: memref<128x32xf32, #tpu.memory_space<vmem>>, %arg4: memref<128x1xf32, #tpu.memory_space<vmem>>, %arg5: memref<1x128x128xf32, #tpu.memory_space<vmem>>) attributes {dimension_semantics = [#tpu.dimension_semantics<parallel>, #tpu.dimension_semantics<parallel>], iteration_bounds = array<i64: 2, 1>, scalar_prefetch = 0 : i64, scratch_operands = 0 : i64, tpu.core_type = #tpu.core_type<tc>, window_params = [{transform_indices = @transform_0, window_bounds = array<i64: 1, 32, 128>}, {pipeline_mode = #tpu.pipeline_mode<synchronous>, transform_indices = @transform_1, window_bounds = array<i64: 128, 32>}, {pipeline_mode = #tpu.pipeline_mode<synchronous>, transform_indices = @transform_2, window_bounds = array<i64: 128, 1>}, {transform_indices = @transform_3, window_bounds = array<i64: 1, 128, 128>}]} {
    %c0 = arith.constant 0 : index
    %c0_0 = arith.constant 0 : index
    %c0_1 = arith.constant 0 : index
    %0 = vector.load %arg2[%c0, %c0_0, %c0_1] : memref<1x32x128xf32, #tpu.memory_space<vmem>>, vector<1x32x128xf32>
    %1 = vector.shape_cast %0 : vector<1x32x128xf32> to vector<32x128xf32>
    %c0_2 = arith.constant 0 : index
    %c0_3 = arith.constant 0 : index
    %2 = vector.load %arg3[%c0_2, %c0_3] : memref<128x32xf32, #tpu.memory_space<vmem>>, vector<128x32xf32>
    %cst = arith.constant dense<0.000000e+00> : vector<128x128xf32>
    %3 = tpu.matmul %2, %1, %cst {dimension_numbers = #tpu.dot_dimension_numbers<[1], [0], [0], [1], [0, 0, 1, 1], [], []>} : vector<128x32xf32>, vector<32x128xf32>, vector<128x128xf32> -> vector<128x128xf32>
    %c0_4 = arith.constant 0 : index
    %c0_5 = arith.constant 0 : index
    %4 = vector.load %arg4[%c0_4, %c0_5] : memref<128x1xf32, #tpu.memory_space<vmem>>, vector<128x1xf32>
    %5 = vector.broadcast %4 : vector<128x1xf32> to vector<128x128xf32>
    %6 = arith.addf %3, %5 : vector<128x128xf32>
    %7 = arith.mulf %6, %6 : vector<128x128xf32>
    %cst_6 = arith.constant dense<0.000000e+00> : vector<128xf32>
    %8 = vector.multi_reduction <add>, %7, %cst_6 [0] : vector<128x128xf32> to vector<128xf32>
    %9 = vector.shape_cast %8 : vector<128xf32> to vector<1x128xf32>
    %cst_7 = arith.constant 1.000000e-24 : f32
    %10 = vector.broadcast %cst_7 : f32 to vector<1x128xf32>
    %11 = arith.maximumf %9, %10 : vector<1x128xf32>
    %12 = math.rsqrt %11 : vector<1x128xf32>
    %13 = vector.broadcast %12 : vector<1x128xf32> to vector<128x128xf32>
    %14 = arith.mulf %6, %13 : vector<128x128xf32>
    %c0_8 = arith.constant 0 : index
    %c0_9 = arith.constant 0 : index
    %c0_10 = arith.constant 0 : index
    %15 = vector.load %arg5[%c0_8, %c0_9, %c0_10] : memref<1x128x128xf32, #tpu.memory_space<vmem>>, vector<1x128x128xf32>
    %16 = vector.shape_cast %15 : vector<1x128x128xf32> to vector<128x128xf32>
    %17 = vector.shape_cast %14 : vector<128x128xf32> to vector<1x128x128xf32>
    tpu.vector_store %arg5[%c0_8, %c0_9, %c0_10], %17 {strides = array<i32>} : memref<1x128x128xf32, #tpu.memory_space<vmem>>, vector<1x128x128xf32>,
    return
  }
  func.func @transform_0(%arg0: i32, %arg1: i32) -> (i32, i32, i32) {
    %c0_i32 = arith.constant 0 : i32
    %c0_i32_0 = arith.constant 0 : i32
    return %arg0, %c0_i32, %arg1 : i32, i32, i32
  }
  func.func @transform_1(%arg0: i32, %arg1: i32) -> (i32, i32) {
    %c0_i32 = arith.constant 0 : i32
    %c0_i32_0 = arith.constant 0 : i32
    %c0_i32_1 = arith.constant 0 : i32
    return %c0_i32, %c0_i32_0 : i32, i32
  }
  func.func @transform_2(%arg0: i32, %arg1: i32) -> (i32, i32) {
    %c0_i32 = arith.constant 0 : i32
    %c0_i32_0 = arith.constant 0 : i32
    %c0_i32_1 = arith.constant 0 : i32
    return %c0_i32, %c0_i32_0 : i32, i32
  }
  func.func @transform_3(%arg0: i32, %arg1: i32) -> (i32, i32, i32) {
    %c0_i32 = arith.constant 0 : i32
    %c0_i32_0 = arith.constant 0 : i32
    return %arg0, %c0_i32, %arg1 : i32, i32, i32
  }
}

</mosaic_0001>

<bundles_post_ra>
// kernel: projection_head_forward.2
= control target key start
LH: loop header
LB: loop body
LE: loop exit
PB: predicated region body
PF: predicated region fallthrough
CT: control target
= control target key end

     0   :  { %s443_s9 = smov 0   ;;  %s445_s10 = smov 0   ;;  %s545_s0 = inlined_call_operand.vmem [shape: f32[2,32,128], index: 0, kind: input, shape index: {}]   ;;  %s546_s1 = inlined_call_operand.vmem [shape: f32[32,32], index: 1, kind: output, shape index: {0}]   ;;  %s547_s2 = inlined_call_operand.vmem [shape: f32[32,1], index: 2, kind: output, shape index: {1}]  }
   0x1   :  { %s447_s11 = smov 0  }
   0x2 LB: > { %s25_s12 = sadd.s32 1, %s421_s10  ;;  %p340_p0 = scmp.ge.s32.totalorder %s425_s11, 1  ;;  %s425_s11 = sphi %s447_s11, %s13_s11   ;;  %s421_s10 = sphi %s445_s10, %s549_s10   ;;  %s417_s9 = sphi %s443_s9, %s548_s9  }
   0x3   : > { %p27_p1 = scmp.ge.s32.totalorder %s25_s12, 2  ;;  %p122_p2 = scmp.lt.s32.totalorder %s425_s11, 3 }
   0x5   : > { %s551_s12 = smov (%p27_p1, %s25_s12), 0  ;;  %p123_p3 = pnand %p340_p0, %p122_p2 }
   0x6   : > { %p142_p4 = scmp.lt.s32.totalorder (!%p123_p3), %s417_s9, 1  ;;  %p150_p5 = scmp.eq.s32.totalorder (!%p123_p3), %s417_s9, 0 }
   0x7   : > { %126 = sbr.rel (%p123_p3) target bundleno = 232 (0xe8), region = 24 }
   0xc   : > { %s553_s9 = smov (!%p142_p4, %s417_s9), 1  ;;  %155 = sbr.rel (!%p150_p5) target bundleno = 17 (0x11), region = 28  ;;  %vm156_vm0 = vcmask (%p150_p5), 261120   ;;  %vm161_vm1 = vcmask (%p150_p5), 7168   ;;  %v427_v0 = vmov (%p150_p5), 0.0  }
   0xd   : > { %s346_s13 = sshll.u32 %s553_s9, 5  ;;  %157 = vst.msk [vmem:[%s546_s1] sm:$0xff] (%p150_p5), %vm156_vm0, %v427_v0  ;;  %158 = vst.msk [vmem:[%s546_s1 + $0x8] sm:$0xff] (%p150_p5), %vm156_vm0, %v427_v0 }
   0xe   : > { %s149_s16 = scalar_lea.vmem %s545_s0, %s346_s13  ;;  %159 = vst.msk [vmem:[%s546_s1 + $0x10] sm:$0xff] (%p150_p5), %vm156_vm0, %v427_v0  ;;  %160 = vst.msk [vmem:[%s546_s1 + $0x18] sm:$0xff] (%p150_p5), %vm156_vm0, %v427_v0 }
   0xf   : > { %162 = vst.msk [vmem:[%s547_s2] sm:$0xff] (%p150_p5), %vm161_vm1, %v427_v0  ;;  %163 = vst.msk [vmem:[%s547_s2 + $0x8] sm:$0xff] (%p150_p5), %vm161_vm1, %v427_v0 }
  0x10   : > { %164 = vst.msk [vmem:[%s547_s2 + $0x10] sm:$0xff] (%p150_p5), %vm161_vm1, %v427_v0  ;;  %165 = vst.msk [vmem:[%s547_s2 + $0x18] sm:$0xff] (%p150_p5), %vm161_vm1, %v427_v0 }
  0x11 PF: > { %v169_v1 = vld [vmem:[%s149_s16 + $0x18] sm:$0xff]  ;;  %v168_v2 = vld [vmem:[%s149_s16 + $0x10] sm:$0xff]  ;;  %v166_v3 = vld [vmem:[%s149_s16] sm:$0xff]  ;;  %vm284_vm2 = vcmask 7168   ;;  %vm263_vm3 = vcmask 261120  }
  0x12   : > { %356 = vmatprep.subr.mxu0 %v169_v1  ;;  %370 = vmatprep.subr.mxu1 %v169_v1  ;;  %v167_v4 = vld [vmem:[%s149_s16 + $0x8] sm:$0xff] }
  0x13   : > { %357 = vmatpush3.xpose.msra.mxu0 %v169_v1  ;;  %374 = vmatpush3.xpose.msra.mxu1 %v169_v1 }
  0x14   : > { %358 = vmatprep.subr.mxu0 %v168_v2  ;;  %371 = vmatprep.subr.mxu1 %v168_v2  ;;  %v171_v17 = vld [vmem:[%s546_s1 + $0x8] sm:$0xff]  ;;  %v170_v21 = vld [vmem:[%s546_s1] sm:$0xff] }
  0x15   : > { %364 = vmatprep.mubr.f32.mxu0 %v166_v3  ;;  %367 = vmatprep.mubr.f32.mxu1 %v168_v2  ;;  %v173_v18 = vld [vmem:[%s546_s1 + $0x18] sm:$0xff]  ;;  %v172_v22 = vld [vmem:[%s546_s1 + $0x10] sm:$0xff] }
  0x16   : > { %276 = vadd.xlane.f32.xlu1 %v168_v2  ;;  %272 = vadd.xlane.f32.xlu0 %v166_v3  ;;  %v268_v6 = vld [vmem:[%s547_s2] sm:$0xff]  ;;  %v269_v12 = vld [vmem:[%s547_s2 + $0x8] sm:$0xff] }
  0x17   : > { %359 = vmatpush3.xpose.msra.mxu0 %v168_v2  ;;  %375 = vmatpush3.xpose.msra.mxu1 %v168_v2  ;;  %v270_v5 = vld [vmem:[%s547_s2 + $0x10] sm:$0xff]  ;;  %v271_v11 = vld [vmem:[%s547_s2 + $0x18] sm:$0xff] }
  0x18   : > { %360 = vmatprep.subr.mxu0 %v167_v4  ;;  %372 = vmatprep.subr.mxu1 %v167_v4 }
  0x1a   : > { %278 = vadd.xlane.f32.xlu1 %v169_v1  ;;  %274 = vadd.xlane.f32.xlu0 %v167_v4 }
  0x1b   : > { %361 = vmatpush3.xpose.msra.mxu0 %v167_v4  ;;  %376 = vmatpush3.xpose.msra.mxu1 %v167_v4 }
  0x1c   : > { %362 = vmatprep.subr.mxu0 %v166_v3  ;;  %373 = vmatprep.subr.mxu1 %v166_v3 }
  0x1f   : > { %363 = vmatpush3.xpose.msra.mxu0 %v166_v3  ;;  %377 = vmatpush3.xpose.msra.mxu1 %v166_v3 }
  0x22   : > { %365 = vmatmul.mubr.f32.vlgmr.msra.gmra.mxu0 %v167_v4  ;;  %368 = vmatmul.mubr.f32.vlgmr.msra.gmra.mxu1 %v169_v1 }
  0x9f   : > { %v277_v7 = vpop.xlane.xlu1 %276  ;;  %v273_v8 = vpop.xlane.xlu0 %272 }
  0xa0   : > { %v282_v9 = vadd.f32 %v277_v7, %v270_v5  ;;  %v280_v10 = vadd.f32 %v273_v8, %v268_v6 }
  0xa2   : > { %287 = vst.msk [vmem:[%s547_s2 + $0x10] sm:$0xff] %vm284_vm2, %v282_v9  ;;  %285 = vst.msk [vmem:[%s547_s2] sm:$0xff] %vm284_vm2, %v280_v10 }
  0xa3   : > { %v279_v13 = vpop.xlane.xlu1 %278  ;;  %v275_v14 = vpop.xlane.xlu0 %274 }
  0xa4   : > { %v283_v15 = vadd.f32 %v279_v13, %v271_v11  ;;  %v281_v16 = vadd.f32 %v275_v14, %v269_v12 }
  0xa6   : > { %288 = vst.msk [vmem:[%s547_s2 + $0x18] sm:$0xff] %vm284_vm2, %v283_v15  ;;  %286 = vst.msk [vmem:[%s547_s2 + $0x8] sm:$0xff] %vm284_vm2, %v281_v16 }
  0xe2   : > { %v366_v19 = vpop.f32.mrf.mxu0  ;;  %v369_v20 = vpop.f32.mrf.mxu1 }
  0xe3   : > { %v260_v23 = vadd.f32 %v366_v19, %v171_v17  ;;  %v262_v24 = vadd.f32 %v369_v20, %v173_v18 }
  0xe4   : > { %v240_v25 = vpop.f32.mrf.mxu0  ;;  %v250_v26 = vpop.f32.mrf.mxu1 }
  0xe5   : > { %265 = vst.msk [vmem:[%s546_s1 + $0x8] sm:$0xff] %vm263_vm3, %v260_v23  ;;  %267 = vst.msk [vmem:[%s546_s1 + $0x18] sm:$0xff] %vm263_vm3, %v262_v24  ;;  %v259_v27 = vadd.f32 %v240_v25, %v170_v21  ;;  %v261_v28 = vadd.f32 %v250_v26, %v172_v22 }
  0xe7   : > { %264 = vst.msk [vmem:[%s546_s1] sm:$0xff] %vm263_vm3, %v259_v27  ;;  %266 = vst.msk [vmem:[%s546_s1 + $0x10] sm:$0xff] %vm263_vm3, %v261_v28 }
  0xe8 PF: > { %s13_s11 = sadd.s32 1, %s425_s11   ;;  %s548_s9 = smov %s421_s10 }
  0xe9   : > { %p10_p6 = scmp.ge.s32.totalorder %s13_s11, 4   ;;  %s549_s10 = smov %s551_s12 }
  0xeb   :  { %12 = sbr.rel (!%p10_p6) target bundleno = 2 (0x2), region = 62 }

// kernel: projection_head_forward.3
= control target key start
LH: loop header
LB: loop body
LE: loop exit
PB: predicated region body
PF: predicated region fallthrough
CT: control target
= control target key end

     0   :  { %s829_s12 = smov 0   ;;  %s831_s13 = smov 0   ;;  %s1026_s0 = inlined_call_operand.vmem [shape: f32[2,32,128], index: 0, kind: input, shape index: {}]   ;;  %s1027_s1 = inlined_call_operand.vmem [shape: f32[128,32], index: 1, kind: input, shape index: {}]   ;;  %s1028_s2 = inlined_call_operand.vmem [shape: f32[128,1], index: 2, kind: input, shape index: {}]   ;;  %s1029_s3 = inlined_call_operand.vmem [shape: f32[2,128,128], index: 3, kind: output, shape index: {}]  }
   0x1   :  { %s833_s14 = smov 0  }
   0x2 LB: > { %s25_s15 = sadd.s32 1, %s802_s13  ;;  %p670_p0 = scmp.ge.s32.totalorder %s806_s14, 1  ;;  %s806_s14 = sphi %s833_s14, %s13_s14   ;;  %s802_s13 = sphi %s831_s13, %s1031_s13   ;;  %s798_s12 = sphi %s829_s12, %s1030_s12  }
   0x3   : > { %p27_p1 = scmp.ge.s32.totalorder %s25_s15, 2  ;;  %p156_p2 = scmp.lt.s32.totalorder %s806_s14, 3 }
   0x5   : > { %s1033_s15 = smov (%p27_p1, %s25_s15), 0  ;;  %p157_p3 = pnand %p670_p0, %p156_p2 }
   0x6   : > { %p186_p4 = scmp.lt.s32.totalorder (!%p157_p3), %s798_s12, 1 }
   0x7   : > { %160 = sbr.rel (%p157_p3) target bundleno = 294 (0x126), region = 32 }
   0xc   : > { %v206_v0 = vld [vmem:[%s1027_s1] sm:$0xff]  ;;  %vm318_vm0 = vcmask 261120   ;;  %s1035_s12 = smov (!%p186_p4, %s798_s12), 1  ;;  %v808_v2 = vmov 0   ;;  %v224_v4 = vld [vmem:[%s1028_s2 + $0x10] sm:$0xff]  ;;  %v207_v9 = vld [vmem:[%s1027_s1 + $0x8] sm:$0xff] }
   0xd   : > { %v214_v1 = vld [vmem:[%s1027_s1 + $0x40] sm:$0xff]  ;;  %723 = vmatprep.mubr.msk.f32.mxu0 %vm318_vm0, %v206_v0  ;;  %780 = vset.pattern.permute.xlu0 %v808_v2  ;;  %s693_s20 = sshll.u32 %s1035_s12, 5  ;;  %v215_v10 = vld [vmem:[%s1027_s1 + $0x48] sm:$0xff]  ;;  %v208_v11 = vld [vmem:[%s1027_s1 + $0x10] sm:$0xff]  ;;  %s694_s11 = sshll.u32 %s1035_s12, 7 }
   0xe   : > { %735 = vmatprep.mubr.msk.f32.mxu1 %vm318_vm0, %v214_v1  ;;  %781 = vset.pattern.permute.xlu1 %v808_v2  ;;  %s193_s23 = scalar_lea.vmem %s1026_s0, %s693_s20  ;;  %v222_v3 = vld [vmem:[%s1028_s2] sm:$0xff]  ;;  %v216_v12 = vld [vmem:[%s1027_s1 + $0x50] sm:$0xff]  ;;  %v223_v13 = vld [vmem:[%s1028_s2 + $0x8] sm:$0xff]  ;;  %s993_s18 = scalar_lea.vmem %s1029_s3, %s694_s11 }
   0xf   : > { %v205_v5 = vld [vmem:[%s193_s23 + $0x18] sm:$0xff]  ;;  %v204_v6 = vld [vmem:[%s193_s23 + $0x10] sm:$0xff]  ;;  %240 = vperm.xlu0 %780, %v222_v3   ;;  %250 = vperm.xlu1 %781, %v224_v4   ;;  %v203_v7 = vld [vmem:[%s193_s23 + $0x8] sm:$0xff] }
  0x10   : > { %715 = vmatprep.subr.mxu0 %v205_v5  ;;  %747 = vmatprep.subr.mxu1 %v205_v5  ;;  %v202_v8 = vld [vmem:[%s193_s23] sm:$0xff]  ;;  %v225_v14 = vld [vmem:[%s1028_s2 + $0x18] sm:$0xff]  ;;  %v227_v20 = vld [vmem:[%s1028_s2 + $0x28] sm:$0xff] }
  0x11   : > { %716 = vmatpush3.msra.mxu0 %v205_v5  ;;  %751 = vmatpush3.msra.mxu1 %v205_v5  ;;  %v209_v15 = vld [vmem:[%s1027_s1 + $0x18] sm:$0xff]  ;;  %v210_v17 = vld [vmem:[%s1027_s1 + $0x20] sm:$0xff]  ;;  %v211_v21 = vld [vmem:[%s1027_s1 + $0x28] sm:$0xff] }
  0x12   : > { %717 = vmatprep.subr.mxu0 %v204_v6  ;;  %748 = vmatprep.subr.mxu1 %v204_v6  ;;  %v217_v16 = vld [vmem:[%s1027_s1 + $0x58] sm:$0xff]  ;;  %v218_v18 = vld [vmem:[%s1027_s1 + $0x60] sm:$0xff]  ;;  %v219_v22 = vld [vmem:[%s1027_s1 + $0x68] sm:$0xff] }
  0x13   : > { %718 = vmatpush3.msra.mxu0 %v204_v6  ;;  %752 = vmatpush3.msra.mxu1 %v204_v6  ;;  %v226_v19 = vld [vmem:[%s1028_s2 + $0x20] sm:$0xff]  ;;  %v212_v23 = vld [vmem:[%s1027_s1 + $0x30] sm:$0xff]  ;;  %v229_v26 = vld [vmem:[%s1028_s2 + $0x38] sm:$0xff] }
  0x14   : > { %719 = vmatprep.subr.mxu0 %v203_v7  ;;  %749 = vmatprep.subr.mxu1 %v203_v7  ;;  %v220_v24 = vld [vmem:[%s1027_s1 + $0x70] sm:$0xff]  ;;  %v213_v27 = vld [vmem:[%s1027_s1 + $0x38] sm:$0xff]  ;;  %v230_v29 = vld [vmem:[%s1028_s2 + $0x40] sm:$0xff] }
  0x15   : > { %720 = vmatpush3.msra.mxu0 %v203_v7  ;;  %753 = vmatpush3.msra.mxu1 %v203_v7  ;;  %v228_v25 = vld [vmem:[%s1028_s2 + $0x30] sm:$0xff]  ;;  %v221_v28 = vld [vmem:[%s1027_s1 + $0x78] sm:$0xff]  ;;  %v231_v30 = vld [vmem:[%s1028_s2 + $0x48] sm:$0xff] }
  0x16   : > { %721 = vmatprep.subr.mxu0 %v202_v8  ;;  %750 = vmatprep.subr.mxu1 %v202_v8  ;;  %v232_v31 = vld [vmem:[%s1028_s2 + $0x50] sm:$0xff]  ;;  %v233_v32 = vld [vmem:[%s1028_s2 + $0x58] sm:$0xff]  ;;  %v234_v33 = vld [vmem:[%s1028_s2 + $0x60] sm:$0xff] }
  0x17   : > { %722 = vmatpush3.msra.mxu0 %v202_v8  ;;  %754 = vmatpush3.msra.mxu1 %v202_v8  ;;  %v235_v34 = vld [vmem:[%s1028_s2 + $0x68] sm:$0xff]  ;;  %v236_v35 = vld [vmem:[%s1028_s2 + $0x70] sm:$0xff]  ;;  %v237_v36 = vld [vmem:[%s1028_s2 + $0x78] sm:$0xff] }
  0x18   : > { %724 = vmatmul.mubr.msk.f32.vlgmr.msra.gmra.mxu0 %vm318_vm0, %v207_v9  ;;  %736 = vmatmul.mubr.msk.f32.vlgmr.msra.gmra.mxu1 %vm318_vm0, %v215_v10 }
  0x19   : > { %726 = vmatprep.mubr.msk.f32.mxu0 %vm318_vm0, %v208_v11  ;;  %738 = vmatprep.mubr.msk.f32.mxu1 %vm318_vm0, %v216_v12 }
  0x1a   : > { %245 = vperm.xlu0 %780, %v223_v13   ;;  %255 = vperm.xlu1 %781, %v225_v14  }
  0x1c   : > { %727 = vmatmul.mubr.msk.f32.gmra.mxu0 %vm318_vm0, %v209_v15  ;;  %739 = vmatmul.mubr.msk.f32.gmra.mxu1 %vm318_vm0, %v217_v16 }
  0x1d   : > { %729 = vmatprep.mubr.msk.f32.mxu0 %vm318_vm0, %v210_v17  ;;  %741 = vmatprep.mubr.msk.f32.mxu1 %vm318_vm0, %v218_v18 }
  0x1e   : > { %260 = vperm.xlu0 %780, %v226_v19   ;;  %265 = vperm.xlu1 %781, %v227_v20  }
  0x20   : > { %730 = vmatmul.mubr.msk.f32.gmra.mxu0 %vm318_vm0, %v211_v21  ;;  %742 = vmatmul.mubr.msk.f32.gmra.mxu1 %vm318_vm0, %v219_v22 }
  0x21   : > { %732 = vmatprep.mubr.msk.f32.mxu0 %vm318_vm0, %v212_v23  ;;  %744 = vmatprep.mubr.msk.f32.mxu1 %vm318_vm0, %v220_v24 }
  0x22   : > { %270 = vperm.xlu0 %780, %v228_v25   ;;  %275 = vperm.xlu1 %781, %v229_v26  }
  0x24   : > { %733 = vmatmul.mubr.msk.f32.gmra.mxu0 %vm318_vm0, %v213_v27  ;;  %745 = vmatmul.mubr.msk.f32.gmra.mxu1 %vm318_vm0, %v221_v28 }
  0x26   : > { %280 = vperm.xlu0 %780, %v230_v29   ;;  %285 = vperm.xlu1 %781, %v231_v30  }
  0x2a   : > { %290 = vperm.xlu0 %780, %v232_v31   ;;  %295 = vperm.xlu1 %781, %v233_v32  }
  0x2e   : > { %300 = vperm.xlu0 %780, %v234_v33   ;;  %305 = vperm.xlu1 %781, %v235_v34  }
  0x32   : > { %310 = vperm.xlu0 %780, %v236_v35   ;;  %315 = vperm.xlu1 %781, %v237_v36  }
  0x8a   : > { %v241_v37 = vpop.permute.xlu0 %240  ;;  %v251_v38 = vpop.permute.xlu1 %250 }
  0x95   : > { %v246_v39 = vpop.permute.xlu0 %245  ;;  %v256_v40 = vpop.permute.xlu1 %255 }
  0x99   : > { %v261_v41 = vpop.permute.xlu0 %260  ;;  %v266_v42 = vpop.permute.xlu1 %265 }
  0x9d   : > { %v271_v47 = vpop.permute.xlu0 %270  ;;  %v276_v51 = vpop.permute.xlu1 %275 }
  0xa1   : > { %v281_v59 = vpop.permute.xlu0 %280  ;;  %v286_v4 = vpop.permute.xlu1 %285 }
  0xa5   : > { %v291_v14 = vpop.permute.xlu0 %290  ;;  %v296_v18 = vpop.permute.xlu1 %295 }
  0xa9   : > { %v301_v26 = vpop.permute.xlu0 %300  ;;  %v306_v31 = vpop.permute.xlu1 %305 }
  0xd8   : > { %v725_v43 = vpop.f32.mrf.mxu0  ;;  %v737_v44 = vpop.f32.mrf.mxu1 }
  0xd9   : > { %v965_v48 = vadd.f32 %v725_v43, %v246_v39  ;;  %v479_v20 = vadd.f32 %v737_v44, %v286_v4  ;;  %v311_v39 = vpop.permute.xlu0 %310  ;;  %v316_v43 = vpop.permute.xlu1 %315 }
  0xda   : > { %v433_v45 = vpop.f32.mrf.mxu0  ;;  %v473_v46 = vpop.f32.mrf.mxu1 }
  0xdb   : > { %v967_v49 = vadd.f32 %v433_v45, %v241_v37  ;;  %v513_v55 = vmul.f32 %v965_v48, %v965_v48  ;;  %v474_v15 = vadd.f32 %v473_v46, %v281_v59  ;;  %v521_v28 = vmul.f32 %v479_v20, %v479_v20 }
  0xdc   : > { %v728_v50 = vpop.f32.mrf.mxu0  ;;  %v740_v53 = vpop.f32.mrf.mxu1 }
  0xdd   : > { %v512_v52 = vmul.f32 %v967_v49, %v967_v49  ;;  %v973_v56 = vadd.f32 %v728_v50, %v256_v40  ;;  %v520_v23 = vmul.f32 %v474_v15, %v474_v15  ;;  %v489_v29 = vadd.f32 %v740_v53, %v296_v18 }
  0xde   : > { %v443_v54 = vpop.f32.mrf.mxu0  ;;  %v483_v62 = vpop.f32.mrf.mxu1 }
  0xdf   : > { %v975_v57 = vadd.f32 %v443_v54, %v251_v38  ;;  %v528_v60 = vadd.f32 %v513_v55, %v512_v52  ;;  %v515_v0 = vmul.f32 %v973_v56, %v973_v56  ;;  %v484_v24 = vadd.f32 %v483_v62, %v291_v14 }
  0xe0   : > { %v731_v58 = vpop.f32.mrf.mxu0  ;;  %v743_v8 = vpop.f32.mrf.mxu1  ;;  %v523_v36 = vmul.f32 %v489_v29, %v489_v29 }
  0xe1   : > { %v514_v61 = vmul.f32 %v975_v57, %v975_v57  ;;  %v981_v2 = vadd.f32 %v731_v58, %v266_v42  ;;  %v522_v32 = vmul.f32 %v484_v24, %v484_v24  ;;  %v499_v37 = vadd.f32 %v743_v8, %v306_v31 }
  0xe2   : > { %v453_v63 = vpop.f32.mrf.mxu0  ;;  %v493_v19 = vpop.f32.mrf.mxu1 }
  0xe3   : > { %v529_v1 = vadd.f32 %v528_v60, %v514_v61  ;;  %v983_v3 = vadd.f32 %v453_v63, %v261_v41  ;;  %v517_v10 = vmul.f32 %v981_v2, %v981_v2  ;;  %v494_v33 = vadd.f32 %v493_v19, %v301_v26 }
  0xe4   : > { %v734_v5 = vpop.f32.mrf.mxu0  ;;  %v746_v27 = vpop.f32.mrf.mxu1  ;;  %v525_v44 = vmul.f32 %v499_v37, %v499_v37 }
  0xe5   : > { %v516_v6 = vmul.f32 %v983_v3, %v983_v3  ;;  %v530_v7 = vadd.f32 %v529_v1, %v515_v0  ;;  %v469_v12 = vadd.f32 %v734_v5, %v276_v51  ;;  %v524_v40 = vmul.f32 %v494_v33, %v494_v33 }
  0xe6   : > { %v463_v9 = vpop.f32.mrf.mxu0  ;;  %v503_v35 = vpop.f32.mrf.mxu1  ;;  %v509_v45 = vadd.f32 %v746_v27, %v316_v43 }
  0xe7   : > { %v531_v11 = vadd.f32 %v530_v7, %v516_v6  ;;  %v464_v13 = vadd.f32 %v463_v9, %v271_v47  ;;  %v519_v21 = vmul.f32 %v469_v12, %v469_v12  ;;  %v504_v41 = vadd.f32 %v503_v35, %v311_v39 }
  0xe8   : > { %v527_v51 = vmul.f32 %v509_v45, %v509_v45 }
  0xe9   : > { %v518_v16 = vmul.f32 %v464_v13, %v464_v13  ;;  %v532_v17 = vadd.f32 %v531_v11, %v517_v10  ;;  %v526_v47 = vmul.f32 %v504_v41, %v504_v41 }
  0xeb   : > { %v533_v22 = vadd.f32 %v532_v17, %v518_v16 }
  0xed   : > { %v534_v25 = vadd.f32 %v533_v22, %v519_v21 }
  0xef   : > { %v535_v30 = vadd.f32 %v534_v25, %v520_v23 }
  0xf1   : > { %v536_v34 = vadd.f32 %v535_v30, %v521_v28 }
  0xf3   : > { %v537_v38 = vadd.f32 %v536_v34, %v522_v32 }
  0xf5   : > { %v538_v42 = vadd.f32 %v537_v38, %v523_v36 }
  0xf7   : > { %v539_v46 = vadd.f32 %v538_v42, %v524_v40 }
  0xf9   : > { %v540_v50 = vadd.f32 %v539_v46, %v525_v44 }
  0xfb   : > { %v541_v52 = vadd.f32 %v540_v50, %v526_v47 }
  0xfd   : > { %v542_v53 = vadd.f32 %v541_v52, %v527_v51 }
  0xff   : > { %v543_v54 = vrot.slane %v542_v53, 4 }
 0x101   : > { %v544_v55 = vadd.f32 %v543_v54, %v542_v53 }
 0x103   : > { %v545_v58 = vrot.slane %v544_v55, 2 }
 0x105   : > { %v546_v59 = vadd.f32 %v545_v58, %v544_v55 }
 0x107   : > { %v547_v60 = vrot.slane %v546_v59, 1 }
 0x109   : > { %v548_v61 = vadd.f32 %v547_v60, %v546_v59 }
 0x10b   : > { %v549_v62 = vmax.f32 %v548_v61, 1e-24 }
 0x10d   : > { %782 = vrsqrt.f32 %v549_v62 }
 0x11a   : > { %v783_v63 = vpop.eup %782 }
 0x11b   : > { %v551_v0 = vmul.f32 %v783_v63, %v967_v49  ;;  %v552_v1 = vmul.f32 %v783_v63, %v965_v48  ;;  %v553_v4 = vmul.f32 %v783_v63, %v975_v57  ;;  %v554_v5 = vmul.f32 %v783_v63, %v973_v56 }
 0x11c   : > { %v555_v6 = vmul.f32 %v783_v63, %v983_v3  ;;  %v556_v7 = vmul.f32 %v783_v63, %v981_v2  ;;  %v557_v8 = vmul.f32 %v783_v63, %v464_v13  ;;  %v558_v9 = vmul.f32 %v783_v63, %v469_v12 }
 0x11d   : > { %v559_v10 = vmul.f32 %v783_v63, %v474_v15  ;;  %v560_v11 = vmul.f32 %v783_v63, %v479_v20  ;;  %v561_v49 = vmul.f32 %v783_v63, %v484_v24  ;;  %v562_v48 = vmul.f32 %v783_v63, %v489_v29  ;;  %567 = vst [vmem:[%s993_s18] sm:$0xff] %v551_v0 }
 0x11e   : > { %568 = vst [vmem:[%s993_s18 + $0x8] sm:$0xff] %v552_v1  ;;  %569 = vst [vmem:[%s993_s18 + $0x10] sm:$0xff] %v553_v4  ;;  %v563_v56 = vmul.f32 %v783_v63, %v494_v33  ;;  %v564_v57 = vmul.f32 %v783_v63, %v499_v37  ;;  %v565_v2 = vmul.f32 %v783_v63, %v504_v41 }
 0x11f   : > { %570 = vst [vmem:[%s993_s18 + $0x18] sm:$0xff] %v554_v5  ;;  %v566_v3 = vmul.f32 %v783_v63, %v509_v45  ;;  %571 = vst [vmem:[%s993_s18 + $0x20] sm:$0xff] %v555_v6 }
 0x120   : > { %572 = vst [vmem:[%s993_s18 + $0x28] sm:$0xff] %v556_v7  ;;  %573 = vst [vmem:[%s993_s18 + $0x30] sm:$0xff] %v557_v8 }
 0x121   : > { %574 = vst [vmem:[%s993_s18 + $0x38] sm:$0xff] %v558_v9  ;;  %575 = vst [vmem:[%s993_s18 + $0x40] sm:$0xff] %v559_v10 }
 0x122   : > { %576 = vst [vmem:[%s993_s18 + $0x48] sm:$0xff] %v560_v11  ;;  %577 = vst [vmem:[%s993_s18 + $0x50] sm:$0xff] %v561_v49 }
 0x123   : > { %578 = vst [vmem:[%s993_s18 + $0x58] sm:$0xff] %v562_v48  ;;  %579 = vst [vmem:[%s993_s18 + $0x60] sm:$0xff] %v563_v56 }
 0x124   : > { %580 = vst [vmem:[%s993_s18 + $0x68] sm:$0xff] %v564_v57  ;;  %581 = vst [vmem:[%s993_s18 + $0x70] sm:$0xff] %v565_v2 }
 0x125   : > { %582 = vst [vmem:[%s993_s18 + $0x78] sm:$0xff] %v566_v3 }
 0x126 PF: > { %s13_s14 = sadd.s32 1, %s806_s14   ;;  %s1030_s12 = smov %s802_s13 }
 0x127   : > { %p10_p5 = scmp.ge.s32.totalorder %s13_s14, 4   ;;  %s1031_s13 = smov %s1033_s15 }
 0x129   :  { %12 = sbr.rel (!%p10_p5) target bundleno = 2 (0x2), region = 62 }

</bundles_post_ra>
